<compile_context>
chip_gen: v5e
topology: v5e:2x2
jax: 0.10.0
libtpu: 0.0.40
codegen_flags: <defaults>
</compile_context>

<pallas_src>
import functools

import jax
import jax.numpy as jnp
from jax import lax
from jax.experimental import pallas as pl
from jax.experimental.pallas import tpu as pltpu

_LANES = 128
_MAX_TILE_ROWS = 8192                  # (8192, 128) f32 tile = 4 MiB / stream
_PIPELINE_BUDGET = 20 * 1024 * 1024    # double-buffered input working set
_VMEM_LIMIT = 40 * 1024 * 1024         # scoped VMEM limit (v7x-safe, > v5e default)


@functools.lru_cache(maxsize=None)
def _num_tensorcores() -> int:
    """Best-effort TensorCores-per-chip query; 1 if unknown (safe default)."""
    try:
        info = pltpu.get_tpu_info()
    except Exception:
        return 1
    for name in ("num_cores", "num_tensorcores", "tensor_core_count",
                 "num_cores_per_chip", "cores_per_chip", "core_count"):
        v = getattr(info, name, None)
        if isinstance(v, int) and v > 0:
            return v
    return 1


def _make_kernel(rows, tile_rows, blocks_per_core, edge_start, needs_edge):
    """Streaming reduction: per-core (1, 128) partial sums of sq-diff and mask."""

    def kernel(o_ref, t_ref, m_ref, sq_out_ref, cnt_out_ref):
        c = pl.program_id(0)           # core / leading axis
        i = pl.program_id(1)           # block within this core

        @pl.when(i == 0)
        def _init():
            sq_out_ref[...] = jnp.zeros_like(sq_out_ref)
            cnt_out_ref[...] = jnp.zeros_like(cnt_out_ref)

        o = o_ref[...].astype(jnp.float32)
        t = t_ref[...].astype(jnp.float32)
        m_raw = m_ref[...]
        if m_raw.dtype == jnp.bool_:
            m = jnp.where(m_raw, jnp.float32(1.0), jnp.float32(0.0))
        else:
            m = m_raw.astype(jnp.float32)

        d = o - t
        sq = d * d * m

        if needs_edge:
            # Raw (unclamped) global block id; blocks >= edge_start are either
            # the ragged last block or duplicated remainder blocks.
            blk = c * blocks_per_core + i

            @pl.when(blk < edge_start)
            def _interior():
                sq_out_ref[...] += jnp.sum(sq, axis=0, keepdims=True)
                cnt_out_ref[...] += jnp.sum(m, axis=0, keepdims=True)

            @pl.when(blk >= edge_start)
            def _edge():
                gidx = blk * tile_rows + lax.broadcasted_iota(
                    jnp.int32, (tile_rows, _LANES), 0)
                valid = gidx < rows
                # Keep jnp.where (not a multiply): it scrubs NaN/Inf garbage in
                # boundary-padded rows and zeroes duplicated remainder blocks.
                sq_out_ref[...] += jnp.sum(jnp.where(valid, sq, 0.0),
                                           axis=0, keepdims=True)
                cnt_out_ref[...] += jnp.sum(jnp.where(valid, m, 0.0),
                                            axis=0, keepdims=True)
        else:
            sq_out_ref[...] += jnp.sum(sq, axis=0, keepdims=True)
            cnt_out_ref[...] += jnp.sum(m, axis=0, keepdims=True)

    return kernel


def _masked_partial_sums(o2, t2, m2, rows, max_tile_rows):
    """pallas_call producing per-core (1, 128) partial sums of sq-diff & mask."""
    bytes_per_row = _LANES * (o2.dtype.itemsize + t2.dtype.itemsize
                              + m2.dtype.itemsize)
    fit_rows = _PIPELINE_BUDGET // (2 * bytes_per_row)   # 2-deep pipeline
    tile_rows = min(int(max_tile_rows), int(fit_rows))
    tile_rows = max(256, (tile_rows // 256) * 256)       # 256-row granularity
    if rows <= tile_rows:
        tile_rows = rows                                 # single full block

    total_blocks = -(-rows // tile_rows)
    ncores = max(1, min(_num_tensorcores(), 2, total_blocks))
    blocks_per_core = -(-total_blocks // ncores)
    has_dup = ncores * blocks_per_core != total_blocks
    ragged = (rows % tile_rows) != 0
    needs_edge = ragged or has_dup
    edge_start = total_blocks - 1 if ragged else total_blocks

    if has_dup:
        last = total_blocks - 1

        def in_index(c, i):
            # Keep the duplicated trailing block in-bounds; its rows are zeroed
            # in-kernel via the global row mask, so nothing is double counted.
            return (jnp.minimum(c * blocks_per_core + i, last), 0)
    else:
        def in_index(c, i):
            return (c * blocks_per_core + i, 0)

    in_spec = pl.BlockSpec((tile_rows, _LANES), in_index)
    out_spec = pl.BlockSpec((1, _LANES), lambda c, i: (c, 0))
    out_struct = jax.ShapeDtypeStruct((ncores, _LANES), jnp.float32)

    if ncores > 1:
        # Drive both TensorCores explicitly (v7x); plain "parallel" does not
        # guarantee a core split on its own.
        core_sem = getattr(pltpu, "CORE_PARALLEL", pltpu.PARALLEL)
        sem = (core_sem, pltpu.ARBITRARY)
    else:
        sem = (pltpu.ARBITRARY, pltpu.ARBITRARY)

    cost = pl.CostEstimate(
        flops=5 * rows * _LANES,
        transcendentals=0,
        bytes_accessed=int(rows * bytes_per_row + 2 * ncores * _LANES * 4),
    )

    kernel = _make_kernel(rows, tile_rows, blocks_per_core, edge_start,
                          needs_edge)

    return pl.pallas_call(
        kernel,
        out_shape=(out_struct, out_struct),
        grid_spec=pltpu.PrefetchScalarGridSpec(
            num_scalar_prefetch=0,
            grid=(ncores, blocks_per_core),
            in_specs=[in_spec, in_spec, in_spec],
            out_specs=(out_spec, out_spec),
        ),
        compiler_params=pltpu.CompilerParams(
            dimension_semantics=sem,
            vmem_limit_bytes=_VMEM_LIMIT,
        ),
        cost_estimate=cost,
    )(o2, t2, m2)


@functools.partial(jax.jit, static_argnames=("max_tile_rows",))
def masked_mse_loss(output, target, mask, *, max_tile_rows=_MAX_TILE_ROWS):
    """loss = sum((output - target)^2 * mask) / max(sum(mask), 1).

    output / target: float arrays (f32 / bf16); mask: bool (or numeric) array
    of the same shape — the data/mask pair of the PyTorch MaskedTensor inputs.
    """
    assert output.shape == target.shape == mask.shape
    n = output.size
    if n == 0:
        return jnp.float32(0.0)        # sum() == 0, clamp(min=1) -> loss 0

    o = output.reshape(-1)
    t = target.reshape(-1)
    m = mask.reshape(-1)

    n_main = (n // _LANES) * _LANES
    n_tail = n - n_main

    # Lane tail (< 128 elements): tiny plain-JAX contribution, no padding copy.
    if n_tail:
        o_t = lax.slice_in_dim(o, n_main, n).astype(jnp.float32)
        t_t = lax.slice_in_dim(t, n_main, n).astype(jnp.float32)
        m_t = lax.slice_in_dim(m, n_main, n).astype(jnp.float32)
        d_t = o_t - t_t
        tail_sq = jnp.sum(d_t * d_t * m_t)
        tail_cnt = jnp.sum(m_t)
    else:
        tail_sq = jnp.float32(0.0)
        tail_cnt = jnp.float32(0.0)

    if n_main == 0:
        return tail_sq / jnp.maximum(tail_cnt, 1.0)

    if n_tail:
        # TODO(synk): a 1-D-block kernel (or ANY-space manual DMA) would avoid
        # this n_main-element slice when n is not a multiple of 128.
        o = lax.slice_in_dim(o, 0, n_main)
        t = lax.slice_in_dim(t, 0, n_main)
        m = lax.slice_in_dim(m, 0, n_main)

    rows = n_main // _LANES
    o2 = o.reshape(rows, _LANES)
    t2 = t.reshape(rows, _LANES)
    m2 = m.reshape(rows, _LANES)       # native dtype (bool = 1 B/elem in HBM)

    sq_part, cnt_part = _masked_partial_sums(o2, t2, m2, rows, max_tile_rows)

    total_sq = jnp.sum(sq_part) + tail_sq
    total_cnt = jnp.sum(cnt_part) + tail_cnt
    return total_sq / jnp.maximum(total_cnt, 1.0)


def masked_mse_loss_ref(output, target, mask):
    """Pure-JAX reference mirroring the PyTorch MaskedMSELoss.forward."""
    sq = (output.astype(jnp.float32) - target.astype(jnp.float32)) ** 2
    msq = sq * mask.astype(jnp.float32)
    valid = jnp.maximum(mask.astype(jnp.float32).sum(), 1.0)
    return msq.sum() / valid


if __name__ == "__main__":
    key = jax.random.PRNGKey(0)
    keys = jax.random.split(key, 9)

    # Test 1: small NCHW f32 tensors (MaskedTensor data/mask), n % 128 == 0,
    # single block, no edge masking, bool mask passed straight to the kernel.
    shape1 = (2, 4, 16, 16)
    out1 = jax.random.normal(keys[0], shape1, dtype=jnp.float32)
    tgt1 = jax.random.normal(keys[1], shape1, dtype=jnp.float32)
    msk1 = jax.random.bernoulli(keys[2], p=0.7, shape=shape1)
    loss1 = jax.block_until_ready(masked_mse_loss(out1, tgt1, msk1))
    ref1 = masked_mse_loss_ref(out1, tgt1, msk1)
    assert jnp.allclose(loss1, ref1, rtol=1e-5, atol=1e-6), (loss1, ref1)

    # Test 2: bf16 tensors with a forced small tile (max_tile_rows=256) so the
    # multi-block grid, resident accumulator and the pl.when-gated ragged last
    # block (800 rows = 3 full blocks + 32-row edge block) are all exercised.
    shape2 = (4, 8, 32, 100)
    out2 = jax.random.normal(keys[3], shape2, dtype=jnp.bfloat16)
    tgt2 = jax.random.normal(keys[4], shape2, dtype=jnp.bfloat16)
    msk2 = jax.random.bernoulli(keys[5], p=0.5, shape=shape2)
    loss2 = jax.block_until_ready(
        masked_mse_loss(out2, tgt2, msk2, max_tile_rows=256))
    ref2 = masked_mse_loss_ref(out2, tgt2, msk2)
    assert jnp.allclose(loss2, ref2, rtol=1e-4, atol=1e-6), (loss2, ref2)

    # Test 3: odd element count (3750): the 38-element lane tail is folded in
    # by the wrapper, the kernel handles a 29-row single block.
    shape3 = (2, 3, 25, 25)
    out3 = jax.random.normal(keys[6], shape3, dtype=jnp.float32)
    tgt3 = jax.random.normal(keys[7], shape3, dtype=jnp.float32)
    msk3 = jax.random.bernoulli(keys[8], p=0.3, shape=shape3)
    loss3 = jax.block_until_ready(masked_mse_loss(out3, tgt3, msk3))
    ref3 = masked_mse_loss_ref(out3, tgt3, msk3)
    assert jnp.allclose(loss3, ref3, rtol=1e-5, atol=1e-6), (loss3, ref3)

    # Test 4: all-False mask -> valid_elements clamps to 1 -> loss == 0.
    msk4 = jnp.zeros(shape1, dtype=jnp.bool_)
    loss4 = jax.block_until_ready(masked_mse_loss(out1, tgt1, msk4))
    assert jnp.allclose(loss4, 0.0, atol=1e-7), loss4

    print("KERNEL_OK")
</pallas_src>

<mosaic_0001>
module attributes {stable_mosaic.version = 11 : i64} {
  func.func @kernel(%arg0: i32, %arg1: i32, %arg2: memref<16x128xf32, #tpu.memory_space<vmem>>, %arg3: memref<16x128xf32, #tpu.memory_space<vmem>>, %arg4: memref<16x128xi32, #tpu.memory_space<vmem>>, %arg5: memref<1x128xf32, #tpu.memory_space<vmem>>, %arg6: memref<1x128xf32, #tpu.memory_space<vmem>>) attributes {dimension_semantics = [#tpu.dimension_semantics<arbitrary>, #tpu.dimension_semantics<arbitrary>], iteration_bounds = array<i64: 1, 1>, scalar_prefetch = 0 : i64, scratch_operands = 0 : i64, tpu.core_type = #tpu.core_type<tc>, window_params = [{transform_indices = @transform_0, window_bounds = array<i64: 16, 128>}, {transform_indices = @transform_1, window_bounds = array<i64: 16, 128>}, {transform_indices = @transform_2, window_bounds = array<i64: 16, 128>}, {transform_indices = @transform_3, window_bounds = array<i64: 1, 128>}, {transform_indices = @transform_4, window_bounds = array<i64: 1, 128>}]} {
    %c0_i32 = arith.constant 0 : i32
    %0 = arith.cmpi eq, %arg1, %c0_i32 : i32
    %1 = arith.extui %0 : i1 to i32
    %c0_i32_0 = arith.constant 0 : i32
    %2 = arith.cmpi ne, %1, %c0_i32_0 : i32
    scf.if %2 {
      %cst_18 = arith.constant 0.000000e+00 : f32
      %23 = vector.broadcast %cst_18 : f32 to vector<1x128xf32>
      %c0_19 = arith.constant 0 : index
      %c0_20 = arith.constant 0 : index
      %24 = vector.load %arg5[%c0_19, %c0_20] : memref<1x128xf32, #tpu.memory_space<vmem>>, vector<1x128xf32>
      tpu.vector_store %arg5[%c0_19, %c0_20], %23 {strides = array<i32>} : memref<1x128xf32, #tpu.memory_space<vmem>>, vector<1x128xf32>,
      %cst_21 = arith.constant 0.000000e+00 : f32
      %25 = vector.broadcast %cst_21 : f32 to vector<1x128xf32>
      %c0_22 = arith.constant 0 : index
      %c0_23 = arith.constant 0 : index
      %26 = vector.load %arg6[%c0_22, %c0_23] : memref<1x128xf32, #tpu.memory_space<vmem>>, vector<1x128xf32>
      tpu.vector_store %arg6[%c0_22, %c0_23], %25 {strides = array<i32>} : memref<1x128xf32, #tpu.memory_space<vmem>>, vector<1x128xf32>,
    } else {
    }
    %c0 = arith.constant 0 : index
    %c0_1 = arith.constant 0 : index
    %3 = vector.load %arg2[%c0, %c0_1] : memref<16x128xf32, #tpu.memory_space<vmem>>, vector<16x128xf32>
    %c0_2 = arith.constant 0 : index
    %c0_3 = arith.constant 0 : index
    %4 = vector.load %arg3[%c0_2, %c0_3] : memref<16x128xf32, #tpu.memory_space<vmem>>, vector<16x128xf32>
    %c0_4 = arith.constant 0 : index
    %c0_5 = arith.constant 0 : index
    %5 = vector.load %arg4[%c0_4, %c0_5] : memref<16x128xi32, #tpu.memory_space<vmem>>, vector<16x128xi32>
    %cst = arith.constant dense<0> : vector<16x128xi32>
    %6 = arith.cmpi ne, %5, %cst : vector<16x128xi32>
    %cst_6 = arith.constant 1.000000e+00 : f32
    %cst_7 = arith.constant 0.000000e+00 : f32
    %7 = vector.broadcast %cst_6 : f32 to vector<16x128xf32>
    %8 = vector.broadcast %cst_7 : f32 to vector<16x128xf32>
    %9 = arith.select %6, %7, %8 : vector<16x128xi1>, vector<16x128xf32>
    %10 = arith.subf %3, %4 : vector<16x128xf32>
    %11 = arith.mulf %10, %10 : vector<16x128xf32>
    %12 = arith.mulf %11, %9 : vector<16x128xf32>
    %c0_8 = arith.constant 0 : index
    %c0_9 = arith.constant 0 : index
    %13 = vector.load %arg5[%c0_8, %c0_9] : memref<1x128xf32, #tpu.memory_space<vmem>>, vector<1x128xf32>
    %cst_10 = arith.constant dense<0.000000e+00> : vector<128xf32>
    %14 = vector.multi_reduction <add>, %12, %cst_10 [0] : vector<16x128xf32> to vector<128xf32>
    %15 = vector.shape_cast %14 : vector<128xf32> to vector<1x128xf32>
    %16 = arith.addf %13, %15 : vector<1x128xf32>
    %c0_11 = arith.constant 0 : index
    %c0_12 = arith.constant 0 : index
    %17 = vector.load %arg5[%c0_11, %c0_12] : memref<1x128xf32, #tpu.memory_space<vmem>>, vector<1x128xf32>
    tpu.vector_store %arg5[%c0_11, %c0_12], %16 {strides = array<i32>} : memref<1x128xf32, #tpu.memory_space<vmem>>, vector<1x128xf32>,
    %c0_13 = arith.constant 0 : index
    %c0_14 = arith.constant 0 : index
    %18 = vector.load %arg6[%c0_13, %c0_14] : memref<1x128xf32, #tpu.memory_space<vmem>>, vector<1x128xf32>
    %cst_15 = arith.constant dense<0.000000e+00> : vector<128xf32>
    %19 = vector.multi_reduction <add>, %9, %cst_15 [0] : vector<16x128xf32> to vector<128xf32>
    %20 = vector.shape_cast %19 : vector<128xf32> to vector<1x128xf32>
    %21 = arith.addf %18, %20 : vector<1x128xf32>
    %c0_16 = arith.constant 0 : index
    %c0_17 = arith.constant 0 : index
    %22 = vector.load %arg6[%c0_16, %c0_17] : memref<1x128xf32, #tpu.memory_space<vmem>>, vector<1x128xf32>
    tpu.vector_store %arg6[%c0_16, %c0_17], %21 {strides = array<i32>} : memref<1x128xf32, #tpu.memory_space<vmem>>, vector<1x128xf32>,
    return
  }
  func.func @transform_0(%arg0: i32, %arg1: i32) -> (i32, i32) {
    %c1_i32 = arith.constant 1 : i32
    %0 = arith.muli %arg0, %c1_i32 : i32
    %1 = arith.addi %0, %arg1 : i32
    %c0_i32 = arith.constant 0 : i32
    %c0_i32_0 = arith.constant 0 : i32
    return %1, %c0_i32 : i32, i32
  }
  func.func @transform_1(%arg0: i32, %arg1: i32) -> (i32, i32) {
    %c1_i32 = arith.constant 1 : i32
    %0 = arith.muli %arg0, %c1_i32 : i32
    %1 = arith.addi %0, %arg1 : i32
    %c0_i32 = arith.constant 0 : i32
    %c0_i32_0 = arith.constant 0 : i32
    return %1, %c0_i32 : i32, i32
  }
  func.func @transform_2(%arg0: i32, %arg1: i32) -> (i32, i32) {
    %c1_i32 = arith.constant 1 : i32
    %0 = arith.muli %arg0, %c1_i32 : i32
    %1 = arith.addi %0, %arg1 : i32
    %c0_i32 = arith.constant 0 : i32
    %c0_i32_0 = arith.constant 0 : i32
    return %1, %c0_i32 : i32, i32
  }
  func.func @transform_3(%arg0: i32, %arg1: i32) -> (i32, i32) {
    %c0_i32 = arith.constant 0 : i32
    %c0_i32_0 = arith.constant 0 : i32
    return %arg0, %c0_i32 : i32, i32
  }
  func.func @transform_4(%arg0: i32, %arg1: i32) -> (i32, i32) {
    %c0_i32 = arith.constant 0 : i32
    %c0_i32_0 = arith.constant 0 : i32
    return %arg0, %c0_i32 : i32, i32
  }
}

</mosaic_0001>

<bundles_post_ra>
// kernel: masked_mse_loss.1
= control target key start
LH: loop header
LB: loop body
LE: loop exit
PB: predicated region body
PF: predicated region fallthrough
CT: control target
= control target key end

     0   :  { %v151_v0 = vmov 0.0   ;;  %s213_s0 = inlined_call_operand.vmem [shape: f32[16,128], index: 0, kind: input, shape index: {}]   ;;  %s214_s1 = inlined_call_operand.vmem [shape: f32[16,128], index: 1, kind: input, shape index: {}]   ;;  %s215_s2 = inlined_call_operand.vmem [shape: s32[16,128], index: 2, kind: input, shape index: {}]   ;;  %s216_s3 = inlined_call_operand.vmem [shape: f32[1,128], index: 3, kind: output, shape index: {0}]   ;;  %s217_s4 = inlined_call_operand.vmem [shape: f32[1,128], index: 4, kind: output, shape index: {1}]  }
   0x1   :  { %86 = vst [vmem:[%s216_s3] sm:$0x1] %v151_v0  ;;  %v88_v1 = vld [vmem:[%s213_s0] sm:$0xff]  ;;  %v89_v2 = vld [vmem:[%s213_s0 + $0x8] sm:$0xff] }
   0x2   :  { %v90_v3 = vld [vmem:[%s214_s1] sm:$0xff]  ;;  %v91_v4 = vld [vmem:[%s214_s1 + $0x8] sm:$0xff]  ;;  %87 = vst [vmem:[%s217_s4] sm:$0x1] %v151_v0 }
   0x3   :  { %v92_v5 = vld [vmem:[%s215_s2] sm:$0xff]  ;;  %v93_v6 = vld [vmem:[%s215_s2 + $0x8] sm:$0xff]  ;;  %v98_v7 = vsub.f32 %v88_v1, %v90_v3  ;;  %v99_v8 = vsub.f32 %v89_v2, %v91_v4 }
   0x4   :  { %vm94_vm0 = vcmp.ne.s32.totalorder %v92_v5, 0  ;;  %vm95_vm1 = vcmp.ne.s32.totalorder %v93_v6, 0 }
   0x5   :  { %v96_v9 = vsel %vm94_vm0, 1.0, %v151_v0  ;;  %v97_v10 = vsel %vm95_vm1, 1.0, %v151_v0  ;;  %v100_v11 = vmul.f32 %v98_v7, %v98_v7  ;;  %v101_v12 = vmul.f32 %v99_v8, %v99_v8 }
   0x6   :  { %v115_v13 = vadd.f32 %v97_v10, %v96_v9 }
   0x7   :  { %v102_v14 = vmul.f32 %v100_v11, %v96_v9  ;;  %v103_v15 = vmul.f32 %v101_v12, %v97_v10 }
   0x8   :  { %v116_v16 = vrot.slane %v115_v13, 4  ;;  %v104_v30 = vld [vmem:[%s216_s3] sm:$0x1] }
   0x9   :  { %v105_v17 = vadd.f32 %v103_v15, %v102_v14  ;;  %v114_v25 = vld [vmem:[%s217_s4] sm:$0x1] }
   0xa   :  { %v117_v18 = vadd.f32 %v116_v16, %v115_v13 }
   0xb   :  { %v106_v19 = vrot.slane %v105_v17, 4 }
   0xc   :  { %v118_v20 = vrot.slane %v117_v18, 2 }
   0xd   :  { %v107_v21 = vadd.f32 %v106_v19, %v105_v17 }
   0xe   :  { %v119_v22 = vadd.f32 %v118_v20, %v117_v18 }
   0xf   :  { %v108_v23 = vrot.slane %v107_v21, 2 }
  0x10   :  { %v120_v24 = vrot.slane %v119_v22, 1 }
  0x11   :  { %v109_v26 = vadd.f32 %v108_v23, %v107_v21 }
  0x12   :  { %v121_v27 = vadd.f32 %v120_v24, %v119_v22 }
  0x13   :  { %v110_v28 = vrot.slane %v109_v26, 1 }
  0x14   :  { %v122_v29 = vadd.f32 %v121_v27, %v114_v25 }
  0x15   :  { %v111_v31 = vadd.f32 %v110_v28, %v109_v26 }
  0x16   :  { %123 = vst [vmem:[%s217_s4] sm:$0x1] %v122_v29 }
  0x17   :  { %v112_v32 = vadd.f32 %v111_v31, %v104_v30 }
  0x19   :  { %113 = vst [vmem:[%s216_s3] sm:$0x1] %v112_v32 }

</bundles_post_ra>
